<compile_context>
chip_gen: v7x
topology: tpu7x:2x2x1
jax: 0.10.0
libtpu: 0.0.40
codegen_flags: <defaults>
</compile_context>

<pallas_src>
from functools import partial

import jax
import jax.numpy as jnp
import numpy as np
from jax import lax
from jax.experimental import pallas as pl
from jax.experimental.pallas import tpu as pltpu


# ---------------------------------------------------------------------------
# In-kernel helpers
# ---------------------------------------------------------------------------

def _shifted_tap(cur, halo, shift, lane128):
    """x[..., t - shift] within a (D, Tt) time tile.

    `halo` holds the last 128 time columns of the previous tile (zeros for the first
    tile of a batch block).  Only the 128-lane halo is rolled per tap (instead of a
    full-width previous tile); its first `shift` lanes are spliced into the rolled
    current tile.  pltpu.roll follows jnp.roll semantics: roll(a, s)[c] = a[(c - s) % n],
    so for c >= s the rolled current tile is x[c - s] and for c < s the rolled halo is
    halo[128 - s + c] -- exactly the halo columns needed.  Requires shift <= 128.
    """
    Tt = cur.shape[-1]
    rolled = pltpu.roll(cur, shift, axis=1)          # (D, Tt)
    halo_rolled = pltpu.roll(halo, shift, axis=1)    # (D, 128)  -- cheap XLU op
    head = jnp.where(lane128 < shift, halo_rolled, rolled[:, :128])
    if Tt == 128:
        return head
    return jnp.concatenate([head, rolled[:, 128:]], axis=1)   # 128-aligned splice


def _ar_conv_kernel(x_ref, w_ref, o_ref, halo_ref, *, Ky):
    """General path: o = x + causal_conv(shift(x, 1)), all Ky taps accumulated on the MXU.

    x_ref   : (Bb, D, Tt)   input tile, time on lanes (Tt multiple of 128)
    w_ref   : (D, Ky*D)     packed weights, w[o, k*D + i] = conv_weight[o, i, k]
    o_ref   : (Bb, D, Tt)   output tile
    halo_ref: (Bb, D, 128)  last 128 time columns of the previous tile (left halo)
    """
    t_idx = pl.program_id(1)
    not_last_t = t_idx + 1 < pl.num_programs(1)

    @pl.when(t_idx == 0)
    def _():  # first time tile of this batch block: halo is the causal zero padding
        halo_ref[...] = jnp.zeros_like(halo_ref)

    Bb, D, Tt = x_ref.shape
    lane128 = lax.broadcasted_iota(jnp.int32, (1, 128), 1)        # single tiny mask iota
    # Per-tap weight blocks: static ref slices (zero-cost), loaded once per grid step.
    w_taps = [w_ref[:, k * D:(k + 1) * D] for k in range(Ky)]

    def body(b, carry):
        xb = x_ref[b]                                             # (D, Tt)
        hb = halo_ref[b]                                          # (D, 128)
        acc = xb.astype(jnp.float32)                              # '+ x' residual
        for k in range(Ky):                                       # static, tiny (Ky taps)
            tap = _shifted_tap(xb, hb, Ky - k, lane128)
            acc = acc + jnp.dot(w_taps[k], tap, preferred_element_type=jnp.float32)
        o_ref[b] = acc.astype(o_ref.dtype)

        @pl.when(not_last_t)  # the halo of the last time tile is never read
        def _():
            halo_ref[b] = xb[:, Tt - 128:]
        return carry

    # fori_loop (not a Python loop) bounds live ranges of the per-row temporaries.
    lax.fori_loop(0, Bb, body, 0, unroll=True)


def _ar_identity_tap_kernel(x_ref, o_ref, halo_ref, *, alpha, shift):
    """Structural fast path for W == alpha*I at tap Ky-2:  o = x + alpha * x[t-2].
    Pure VPU/XLU -- no MXU work and no weight DMA."""
    t_idx = pl.program_id(1)
    not_last_t = t_idx + 1 < pl.num_programs(1)

    @pl.when(t_idx == 0)
    def _():
        halo_ref[...] = jnp.zeros_like(halo_ref)

    Bb, D, Tt = x_ref.shape
    lane128 = lax.broadcasted_iota(jnp.int32, (1, 128), 1)
    a = jnp.float32(alpha)

    def body(b, carry):
        xb = x_ref[b]
        x_sh = _shifted_tap(xb, halo_ref[b], shift, lane128)
        # f32 math is safe on v5e (no bf16 VALU); the path is HBM-bound so the casts are
        # noise on v6e/v7x.
        o_ref[b] = (xb.astype(jnp.float32)
                    + a * x_sh.astype(jnp.float32)).astype(o_ref.dtype)

        @pl.when(not_last_t)
        def _():
            halo_ref[b] = xb[:, Tt - 128:]
        return carry

    lax.fori_loop(0, Bb, body, 0, unroll=True)


# ---------------------------------------------------------------------------
# Generation-aware tiling / VMEM budgeting
# ---------------------------------------------------------------------------

def _vmem_capacity_bytes():
    try:
        return int(pltpu.get_tpu_info().vmem_capacity_bytes)
    except Exception:
        return 64 * 1024 * 1024   # conservative fallback = v7x per-core VMEM


def _choose_tiling(B, D, T_pad, x_itemsize, resident_w_bytes, max_t_tile=None):
    """Pick (Bb, Tt, vmem_limit_bytes).

    Large lane-dense tiles on 128 MiB parts (v5e/v6e), clamped with headroom on v7x's
    64 MiB.  Footprint model: double-buffered input + output tiles, the 128-lane halo
    carry, and the (double-buffered) resident weights.  Prefer leaving >= 2 batch blocks
    so the batch ("parallel") axis can be sharded across v7x's 2 TensorCores.
    """
    cap = _vmem_capacity_bytes()
    vmem_limit = min(int(cap * 0.70), 96 * 1024 * 1024)
    budget = int(vmem_limit * 0.85)

    def footprint(bb, tt):
        return bb * D * x_itemsize * (4 * tt + 128) + resident_w_bytes

    t_target = 1024 if cap >= (100 << 20) else 512
    if max_t_tile is not None:
        t_target = max(128, (int(max_t_tile) // 128) * 128)
    t_start = min(T_pad, t_target)
    # T_pad is a multiple of 128, so 128 always divides it: a candidate always exists.
    tt_candidates = [c for c in range(t_start, 127, -128) if T_pad % c == 0] or [128]

    for tt in tt_candidates:
        feas = [c for c in range(min(B, 8), 0, -1)
                if B % c == 0 and footprint(c, tt) <= budget]
        if not feas:
            continue
        bb = next((c for c in feas if B // c >= 2), feas[0])
        return bb, tt, vmem_limit

    # Even (Bb=1, Tt=128) exceeds the budget (very large D): run anyway with a raised limit.
    # TODO(synk): tile the channel dimension over an extra grid axis for huge D.
    tt = tt_candidates[-1]
    need = footprint(1, tt) + (8 << 20)
    return 1, tt, int(min(max(vmem_limit, need), cap))


# ---------------------------------------------------------------------------
# Wrapper
# ---------------------------------------------------------------------------

def auto_regressive_causal_output(x, conv_weight, Ky, *, identity_tap_alpha=None,
                                  max_t_tile=None):
    """x: (B, D, T) (same layout as the PyTorch Conv1d input).
    conv_weight: (D_out, D_in, Ky) (same layout as nn.Conv1d.weight).
    identity_tap_alpha: if the weights are known to retain the alpha*I single-tap init,
    pass alpha to take the MXU-free fast path.  Returns (B, D, T)."""
    B, D, T = x.shape
    assert conv_weight.shape == (D, D, Ky)
    assert 2 <= Ky <= 128   # module init writes tap Ky-2; halo holds 128 past columns

    # Lane-dense time tiles: pad T up to a multiple of 128 (trailing zeros are causally
    # inert) and slice the result back; avoids masked vst.msk partial stores and the
    # "Tt = T" VMEM blow-up fallback.
    T_pad = ((T + 127) // 128) * 128
    if T_pad != T:
        x = jnp.pad(x, ((0, 0), (0, 0), (0, T_pad - T)))

    identity_path = identity_tap_alpha is not None
    w_resident = 0 if identity_path else 2 * Ky * D * D * conv_weight.dtype.itemsize
    Bb, Tt, vmem_limit = _choose_tiling(B, D, T_pad, x.dtype.itemsize, w_resident,
                                        max_t_tile=max_t_tile)
    grid = (B // Bb, T_pad // Tt)

    data_spec = pl.BlockSpec((Bb, D, Tt), lambda b, t: (b, 0, t))
    compiler_params = pltpu.CompilerParams(
        # batch blocks are independent (megacore shardable); the time axis carries the
        # left-halo scratch across tiles so it must stay "arbitrary".
        dimension_semantics=("parallel", "arbitrary"),
        vmem_limit_bytes=vmem_limit,
    )
    # 128-lane halo carry: only the last Ky (<=128) columns of the previous tile are ever
    # read, so never store/reload the whole previous tile.
    scratch = [pltpu.VMEM((Bb, D, 128), x.dtype)]

    if identity_path:
        out = pl.pallas_call(
            partial(_ar_identity_tap_kernel, alpha=float(identity_tap_alpha), shift=2),
            out_shape=jax.ShapeDtypeStruct((B, D, T_pad), x.dtype),
            grid_spec=pltpu.PrefetchScalarGridSpec(
                num_scalar_prefetch=0,
                grid=grid,
                in_specs=[data_spec],
                out_specs=data_spec,
                scratch_shapes=scratch,
            ),
            compiler_params=compiler_params,
        )(x)
    else:
        # Pack W[o, i, k] -> W_packed[o, k*D + i] once (tiny, outside the hot path); the
        # kernel takes per-tap (D, D) blocks as static ref slices.
        w_packed = jnp.transpose(conv_weight, (0, 2, 1)).reshape(D, Ky * D)
        # TODO(synk): for very large D (Ky*D^2 weights ~10+ MiB) single-buffer the weight
        # block (pl.Buffered(1)) or tile the output-channel dim over an extra grid axis.
        out = pl.pallas_call(
            partial(_ar_conv_kernel, Ky=Ky),
            out_shape=jax.ShapeDtypeStruct((B, D, T_pad), x.dtype),
            grid_spec=pltpu.PrefetchScalarGridSpec(
                num_scalar_prefetch=0,
                grid=grid,
                in_specs=[
                    data_spec,
                    pl.BlockSpec((D, Ky * D), lambda b, t: (0, 0)),  # weights stay resident
                ],
                out_specs=data_spec,
                scratch_shapes=scratch,
            ),
            compiler_params=compiler_params,
        )(x, w_packed)

    return out[:, :, :T] if T_pad != T else out


# ---------------------------------------------------------------------------
# Pure-JAX reference (PyTorch forward) and tests
# ---------------------------------------------------------------------------

def _reference(x_bdt, conv_weight, Ky):
    B, D, T = x_bdt.shape
    y = x_bdt.astype(jnp.float32)
    for k in range(Ky):
        shift = Ky - k
        if shift >= T:
            continue
        x_sh = jnp.concatenate(
            [jnp.zeros((B, D, shift), x_bdt.dtype), x_bdt[:, :, : T - shift]], axis=2)
        y = y + jnp.einsum('oi,bit->bot',
                           conv_weight[:, :, k].astype(jnp.float32),
                           x_sh.astype(jnp.float32))
    return y.astype(x_bdt.dtype)


if __name__ == "__main__":
    k1, k2, k3, k4, k5 = jax.random.split(jax.random.PRNGKey(0), 5)

    Ky, alpha = 2, 0.9
    B, D, T = 2, 8, 128
    x = jax.random.normal(k1, (B, D, T), dtype=jnp.float32)

    # General (as-if-trained) weights: exercises every tap of the fused-conv path.
    w_general = 0.1 * jax.random.normal(k2, (D, D, Ky), dtype=jnp.float32)
    y = jax.block_until_ready(auto_regressive_causal_output(x, w_general, Ky))
    np.testing.assert_allclose(np.asarray(y), np.asarray(_reference(x, w_general, Ky)),
                               rtol=1e-5, atol=1e-5)

    # Structural init weights (zeros except W[:,:,-2] = alpha*I), exactly as in __init__:
    # check both the general path and the MXU-free fast path.
    w_init = jnp.zeros((D, D, Ky), jnp.float32).at[:, :, -2].set(
        alpha * jnp.eye(D, dtype=jnp.float32))
    y_ref_init = _reference(x, w_init, Ky)
    y_gen = jax.block_until_ready(auto_regressive_causal_output(x, w_init, Ky))
    np.testing.assert_allclose(np.asarray(y_gen), np.asarray(y_ref_init),
                               rtol=1e-5, atol=1e-5)
    y_fast = jax.block_until_ready(
        auto_regressive_causal_output(x, w_init, Ky, identity_tap_alpha=alpha))
    np.testing.assert_allclose(np.asarray(y_fast), np.asarray(y_ref_init),
                               rtol=1e-5, atol=1e-5)

    # Multi-time-tile config (forced Tt=128): exercises the 128-lane halo carry.
    B2, D2, T2 = 2, 8, 256
    x2 = jax.random.normal(k3, (B2, D2, T2), dtype=jnp.float32)
    w2 = 0.1 * jax.random.normal(k4, (D2, D2, Ky), dtype=jnp.float32)
    y2 = jax.block_until_ready(
        auto_regressive_causal_output(x2, w2, Ky, max_t_tile=128))
    np.testing.assert_allclose(np.asarray(y2), np.asarray(_reference(x2, w2, Ky)),
                               rtol=1e-5, atol=1e-5)

    # Non-multiple-of-128 T (padding + slice back), Ky=3 multi-tap, multi-tile.
    Ky3, B3, D3, T3 = 3, 2, 16, 200
    x3 = jax.random.normal(k5, (B3, D3, T3), dtype=jnp.float32)
    w3 = 0.1 * jax.random.normal(k2, (D3, D3, Ky3), dtype=jnp.float32)
    y3 = jax.block_until_ready(
        auto_regressive_causal_output(x3, w3, Ky3, max_t_tile=128))
    np.testing.assert_allclose(np.asarray(y3), np.asarray(_reference(x3, w3, Ky3)),
                               rtol=1e-5, atol=1e-5)

    # Identity fast path across a tile boundary with padding.
    w3i = jnp.zeros((D3, D3, Ky3), jnp.float32).at[:, :, -2].set(
        0.5 * jnp.eye(D3, dtype=jnp.float32))
    y3f = jax.block_until_ready(
        auto_regressive_causal_output(x3, w3i, Ky3, identity_tap_alpha=0.5,
                                      max_t_tile=128))
    np.testing.assert_allclose(np.asarray(y3f), np.asarray(_reference(x3, w3i, Ky3)),
                               rtol=1e-5, atol=1e-5)

    print("KERNEL_OK")
</pallas_src>

<mosaic_0001>
module attributes {stable_mosaic.version = 11 : i64} {
  func.func @_ar_conv_kernel(%arg0: i32, %arg1: i32, %arg2: memref<1x8x128xf32, #tpu.memory_space<vmem>>, %arg3: memref<8x16xf32, #tpu.memory_space<vmem>>, %arg4: memref<1x8x128xf32, #tpu.memory_space<vmem>>, %arg5: memref<1x8x128xf32, #tpu.memory_space<vmem>>) attributes {dimension_semantics = [#tpu.dimension_semantics<parallel>, #tpu.dimension_semantics<arbitrary>], iteration_bounds = array<i64: 2, 1>, scalar_prefetch = 0 : i64, scratch_operands = 1 : i64, tpu.core_type = #tpu.core_type<tc>, window_params = [{transform_indices = @transform_0, window_bounds = array<i64: 1, 8, 128>}, {pipeline_mode = #tpu.pipeline_mode<synchronous>, transform_indices = @transform_1, window_bounds = array<i64: 8, 16>}, {transform_indices = @transform_2, window_bounds = array<i64: 1, 8, 128>}]} {
    %c1_i32 = arith.constant 1 : i32
    %0 = arith.addi %arg1, %c1_i32 : i32
    %c1_i32_0 = arith.constant 1 : i32
    %1 = arith.cmpi slt, %0, %c1_i32_0 : i32
    %c0_i32 = arith.constant 0 : i32
    %2 = arith.cmpi eq, %arg1, %c0_i32 : i32
    %3 = arith.extui %2 : i1 to i32
    %c0_i32_1 = arith.constant 0 : i32
    %4 = arith.cmpi ne, %3, %c0_i32_1 : i32
    scf.if %4 {
      %cst_19 = arith.constant 0.000000e+00 : f32
      %38 = vector.broadcast %cst_19 : f32 to vector<1x8x128xf32>
      %c0_20 = arith.constant 0 : index
      %c0_21 = arith.constant 0 : index
      %c0_22 = arith.constant 0 : index
      %39 = vector.load %arg5[%c0_20, %c0_21, %c0_22] : memref<1x8x128xf32, #tpu.memory_space<vmem>>, vector<1x8x128xf32>
      tpu.vector_store %arg5[%c0_20, %c0_21, %c0_22], %38 {strides = array<i32>} : memref<1x8x128xf32, #tpu.memory_space<vmem>>, vector<1x8x128xf32>,
    } else {
    }
    %5 = tpu.iota {dimensions = array<i32: 1>} : vector<1x128xi32>
    %c0 = arith.constant 0 : index
    %c0_2 = arith.constant 0 : index
    %6 = vector.load %arg3[%c0, %c0_2] : memref<8x16xf32, #tpu.memory_space<vmem>>, vector<8x8xf32>
    %c0_3 = arith.constant 0 : index
    %c8 = arith.constant 8 : index
    %7 = vector.load %arg3[%c0_3, %c8] : memref<8x16xf32, #tpu.memory_space<vmem>>, vector<8x8xf32>
    %c0_i32_4 = arith.constant 0 : i32
    %8 = arith.index_cast %c0_i32_4 : i32 to index
    %c0_5 = arith.constant 0 : index
    %c0_6 = arith.constant 0 : index
    %9 = vector.load %arg2[%8, %c0_5, %c0_6] : memref<1x8x128xf32, #tpu.memory_space<vmem>>, vector<1x8x128xf32>
    %10 = vector.shape_cast %9 : vector<1x8x128xf32> to vector<8x128xf32>
    %11 = arith.index_cast %c0_i32_4 : i32 to index
    %c0_7 = arith.constant 0 : index
    %c0_8 = arith.constant 0 : index
    %12 = vector.load %arg5[%11, %c0_7, %c0_8] : memref<1x8x128xf32, #tpu.memory_space<vmem>>, vector<1x8x128xf32>
    %13 = vector.shape_cast %12 : vector<1x8x128xf32> to vector<8x128xf32>
    %c2_i32 = arith.constant 2 : i32
    %14 = tpu.dynamic_rotate %10 by %c2_i32 dim 1 : vector<8x128xf32>, i32 -> vector<8x128xf32>
    %c2_i32_9 = arith.constant 2 : i32
    %15 = tpu.dynamic_rotate %13 by %c2_i32_9 dim 1 : vector<8x128xf32>, i32 -> vector<8x128xf32>
    %c2_i32_10 = arith.constant 2 : i32
    %16 = vector.broadcast %c2_i32_10 : i32 to vector<1x128xi32>
    %17 = arith.cmpi slt, %5, %16 : vector<1x128xi32>
    %18 = vector.shape_cast %17 : vector<1x128xi1> to vector<1x128xi1>
    %19 = vector.broadcast %18 : vector<1x128xi1> to vector<8x128xi1>
    %20 = arith.select %19, %15, %14 : vector<8x128xi1>, vector<8x128xf32>
    %cst = arith.constant dense<0.000000e+00> : vector<8x128xf32>
    %21 = tpu.matmul %6, %20, %cst {dimension_numbers = #tpu.dot_dimension_numbers<[1], [0], [0], [1], [0, 0, 1, 1], [], []>} : vector<8x8xf32>, vector<8x128xf32>, vector<8x128xf32> -> vector<8x128xf32>
    %22 = arith.addf %10, %21 : vector<8x128xf32>
    %c1_i32_11 = arith.constant 1 : i32
    %23 = tpu.dynamic_rotate %10 by %c1_i32_11 dim 1 : vector<8x128xf32>, i32 -> vector<8x128xf32>
    %c1_i32_12 = arith.constant 1 : i32
    %24 = tpu.dynamic_rotate %13 by %c1_i32_12 dim 1 : vector<8x128xf32>, i32 -> vector<8x128xf32>
    %c1_i32_13 = arith.constant 1 : i32
    %25 = vector.broadcast %c1_i32_13 : i32 to vector<1x128xi32>
    %26 = arith.cmpi slt, %5, %25 : vector<1x128xi32>
    %27 = vector.shape_cast %26 : vector<1x128xi1> to vector<1x128xi1>
    %28 = vector.broadcast %27 : vector<1x128xi1> to vector<8x128xi1>
    %29 = arith.select %28, %24, %23 : vector<8x128xi1>, vector<8x128xf32>
    %cst_14 = arith.constant dense<0.000000e+00> : vector<8x128xf32>
    %30 = tpu.matmul %7, %29, %cst_14 {dimension_numbers = #tpu.dot_dimension_numbers<[1], [0], [0], [1], [0, 0, 1, 1], [], []>} : vector<8x8xf32>, vector<8x128xf32>, vector<8x128xf32> -> vector<8x128xf32>
    %31 = arith.addf %22, %30 : vector<8x128xf32>
    %32 = arith.index_cast %c0_i32_4 : i32 to index
    %c0_15 = arith.constant 0 : index
    %c0_16 = arith.constant 0 : index
    %33 = vector.load %arg4[%32, %c0_15, %c0_16] : memref<1x8x128xf32, #tpu.memory_space<vmem>>, vector<1x8x128xf32>
    %34 = vector.shape_cast %33 : vector<1x8x128xf32> to vector<8x128xf32>
    %35 = vector.shape_cast %31 : vector<8x128xf32> to vector<1x8x128xf32>
    tpu.vector_store %arg4[%32, %c0_15, %c0_16], %35 {strides = array<i32>} : memref<1x8x128xf32, #tpu.memory_space<vmem>>, vector<1x8x128xf32>,
    %36 = arith.extui %1 : i1 to i32
    %c0_i32_17 = arith.constant 0 : i32
    %37 = arith.cmpi ne, %36, %c0_i32_17 : i32
    scf.if %37 {
      %38 = arith.index_cast %c0_i32_4 : i32 to index
      %c0_19 = arith.constant 0 : index
      %c0_20 = arith.constant 0 : index
      %39 = vector.load %arg5[%38, %c0_19, %c0_20] : memref<1x8x128xf32, #tpu.memory_space<vmem>>, vector<1x8x128xf32>
      %40 = vector.shape_cast %39 : vector<1x8x128xf32> to vector<8x128xf32>
      %41 = vector.shape_cast %10 : vector<8x128xf32> to vector<1x8x128xf32>
      tpu.vector_store %arg5[%38, %c0_19, %c0_20], %41 {strides = array<i32>} : memref<1x8x128xf32, #tpu.memory_space<vmem>>, vector<1x8x128xf32>,
    } else {
    }
    %c1_i32_18 = arith.constant 1 : i32
    return
  }
  func.func @transform_0(%arg0: i32, %arg1: i32) -> (i32, i32, i32) {
    %c0_i32 = arith.constant 0 : i32
    %c0_i32_0 = arith.constant 0 : i32
    return %arg0, %c0_i32, %arg1 : i32, i32, i32
  }
  func.func @transform_1(%arg0: i32, %arg1: i32) -> (i32, i32) {
    %c0_i32 = arith.constant 0 : i32
    %c0_i32_0 = arith.constant 0 : i32
    %c0_i32_1 = arith.constant 0 : i32
    return %c0_i32, %c0_i32_0 : i32, i32
  }
  func.func @transform_2(%arg0: i32, %arg1: i32) -> (i32, i32, i32) {
    %c0_i32 = arith.constant 0 : i32
    %c0_i32_0 = arith.constant 0 : i32
    return %arg0, %c0_i32, %arg1 : i32, i32, i32
  }
}

</mosaic_0001>

<bundles_post_ra>
// kernel: tpu_custom_call.1
= control target key start
LH: loop header
LB: loop body
LE: loop exit
PB: predicated region body
PF: predicated region fallthrough
CT: control target
= control target key end

     0   :  { %7 = vsyncpa [#allocation4], 0  ;;  %s977_s0 = inlined_call_operand.hbm [shape: f32[2,8,128], index: 0, kind: input, shape index: {}]   ;;  %s978_s1 = inlined_call_operand.hbm [shape: f32[8,16], index: 1, kind: input, shape index: {}]   ;;  %s979_s2 = inlined_call_operand.hbm [shape: f32[2,8,128], index: 2, kind: output, shape index: {}]  }
   0x1   :  { %9 = vsyncpa [#allocation4 + $0x1], 0 }
   0x2   :  { %10 = vsyncpa [#allocation7], 0 }
   0x3   :  { %11 = vsyncpa [#allocation5], 0 }
   0x4   :  { %13 = vsyncpa [#allocation5 + $0x1], 0  ;;  %s757_s9 = smov 0   ;;  %s759_s10 = smov 0  }
   0x5   :  { %s761_s11 = smov 0   ;;  %s763_s12 = smov 0  }
   0x6   :  { %s765_s13 = smov 0   ;;  %s767_s14 = smov 0  }
   0x7 LB: > { %s477_s15 = sadd.s32 4294967295, %s732_s14   ;;  %s478_s16 = sadd.s32 4294967294, %s732_s14   ;;  %s732_s14 = sphi %s767_s14, %s19_s14   ;;  %s728_s13 = sphi %s765_s13, %s1004_s13   ;;  %s724_s12 = sphi %s763_s12, %s1003_s12   ;;  %s720_s11 = sphi %s761_s11, %s1002_s11   ;;  %s716_s10 = sphi %s759_s10, %s1001_s10   ;;  %s712_s9 = sphi %s757_s9, %s1000_s9  }
   0x8   : > { %p53_p0 = scmp.ne.s32.totalorder %s716_s10, %s712_s9  ;;  %p791_p1 = scmp.eq.s32.totalorder %s477_s15, 0 }
   0x9   : > { %p795_p2 = scmp.eq.s32.totalorder %s477_s15, 1  ;;  %p106_p3 = scmp.eq.s32.totalorder %s478_s16, 1 }
   0xa   : > { %s984_s17 = scalar_select %p791_p1, 1, 0 }
   0xb   : > { %s985_s18 = scalar_select %p795_p2, 1, 0 }
   0xc   : > { %p801_p4 = por %p791_p1, %p53_p0  ;;  %p479_p5 = scmp.ge.s32.totalorder %s732_s14, 1 }
   0xd   : > { %p806_p6 = por %p106_p3, %p53_p0  ;;  %p113_p7 = scmp.lt.s32.totalorder %s732_s14, 3 }
   0xe   : > { %s986_s19 = scalar_select %p801_p4, 1, 0 }
   0xf   : > { %s987_s20 = scalar_select %p806_p6, 1, 0 }
  0x10   : > { %p811_p8 = pnand %p479_p5, %p113_p7  ;;  %s734_s22 = smov [#allocation6]  }
  0x11   : > { %s126_s23 = sshll.u32 %s734_s22, 4  ;;  %s31_s25 = sadd.s32 1, %s728_s13  ;;  %s127_s23 = int_to_ptr.vmem [resolvable:$true] %s126_s23 }
  0x12   : > { %s988_s21 = scalar_select %p811_p8, 1, 0 }
  0x13   : > { %p518_p10 = pneg %p811_p8  ;;  %s40_s26 = sadd.s32 1, %s720_s11 }
  0x14   : > { %p826_p12 = scmp.ge.s32.totalorder %s31_s25, 2  ;;  %s588_s30 = scalar_lea.hbm %s978_s1, 128 }
  0x15   : > { %p820_p11 = pnand %p518_p10, %p791_p1  ;;  %p589_p13 = scmp.ne.s32.totalorder %s978_s1, %s588_s30 }
  0x16   : > { %s990_s27 = scalar_select %p826_p12, 1, 0 }
  0x17   : > { %p590_p0 = pneg %p820_p11  ;;  %p595_p7 = scmp.lt.u32.totalorder %s588_s30, %s978_s1 }
  0x19   : > { %p591_p3 = pnand %p590_p0, %p589_p13 }
  0x1b   : > { %p592_p5 = pneg %p591_p3 }
  0x1d   : > { %p597_p10 = pnand %p595_p7, %p592_p5 }
  0x1f   : > { %600 = shalt.err (!%p597_p10)
}
  0x20   : > { %s601_s7 = scalar_lea.vmem %s127_s23, 128  ;;  %p609_p4 = scmp.lt.s32.totalorder %s127_s23, %s127_s23 }
  0x21   : > { %p602_p9 = scmp.ne.s32.totalorder %s127_s23, %s601_s7  ;;  %p610_p8 = scmp.lt.s32.totalorder %s601_s7, %s601_s7 }
  0x23   : > { %p604_p6 = pnand %p602_p9, %p590_p0  ;;  %p611_p2 = por %p610_p8, %p609_p4 }
  0x25   : > { %p605_p1 = pneg %p604_p6 }
  0x27   : > { %p612_p12 = pnand %p611_p2, %p605_p1 }
  0x29   : > { %615 = shalt.err (!%p612_p12)
}
  0x2a   : > { %521 = dma.hbm_to_vmem [thread:$0]  (!%p820_p11), %s978_s1, 128, %s127_s23, [#allocation7]  }
  0x2b   : > { %p991_p4 = scmp.ne.s32.totalorder %s990_s27, 0  ;;  %p47_p1 = scmp.ne.s32.totalorder %s720_s11, %s716_s10 }
  0x2c   : > { %p48_p2 = scmp.eq.s32.totalorder %s732_s14, 0  ;;  %p531_p6 = scmp.lt.s32.totalorder %s732_s14, 2 }
  0x2d   : > { %s1006_s25 = smov (%p991_p4, %s31_s25), 0  ;;  %p992_p12 = scmp.ne.s32.totalorder %s985_s18, 0 }
  0x2e   : > { %s35_s16 = ssub.s32 %s728_s13, %s1006_s25  ;;  %p49_p9 = por %p48_p2, %p47_p1 }
  0x2f   : > { %p38_p8 = scmp.eq.s32.totalorder %s35_s16, 0  ;;  %p858_p13 = por %p992_p12, %p47_p1 }
  0x30   : > { %s137_s24 = sand.u32 1, %s720_s11   ;;  %s483_s27 = sshll.u32 %s728_s13, 7 }
  0x31   : > { %s866_s28 = scalar_select %p38_p8, %s720_s11, %s40_s26  }
  0x32   : > { %s482_s23 = sshll.u32 %s137_s24, 3  ;;  %s872_s3 = scalar_lea.hbm %s977_s0, %s483_s27 }
  0x33   : > { %s141_s18 = scalar_lea.vmem [#allocation3], %s482_s23  ;;  %p876_p11 = pnand %p531_p6, %p49_p9 }
  0x34   : > { %s149_s4 = sshll.u32 %s141_s18, 4  ;;  %s138_s26 = scalar_lea.sflag [#allocation4], %s137_s24  ;;  %s874_s4 = int_to_ptr.vmem [resolvable:$true] %s149_s4 }
  0x35   : > { %s616_s6 = scalar_lea.hbm %s872_s3, 128  ;;  %p618_p3 = pneg %p876_p11 }
  0x36   : > { %p617_p0 = scmp.ne.s32.totalorder %s872_s3, %s616_s6  ;;  %s621_s15 = scalar_lea.hbm %s977_s0, 256 }
  0x37   : > { %p622_p10 = scmp.lt.u32.totalorder %s872_s3, %s977_s0  ;;  %p623_p4 = scmp.lt.u32.totalorder %s621_s15, %s616_s6 }
  0x38   : > { %p619_p5 = pnand %p618_p3, %p617_p0  ;;  %p625_p2 = scmp.lt.u32.totalorder %s616_s6, %s872_s3 }
  0x39   : > { %p624_p1 = por %p623_p4, %p622_p10 }
  0x3a   : > { %p620_p7 = pneg %p619_p5 }
  0x3b   : > { %p626_p6 = por %p625_p2, %p624_p1 }
  0x3d   : > { %p627_p8 = pnand %p626_p6, %p620_p7 }
  0x3f   : > { %630 = shalt.err (!%p627_p8)
}
  0x40   : > { %s631_s24 = scalar_lea.vmem %s874_s4, 128  ;;  %s735_s27 = smov [#allocation3]  }
  0x41   : > { %p632_p9 = scmp.ne.s32.totalorder %s874_s4, %s631_s24  ;;  %s636_s29 = sshll.u32 %s735_s27, 4  ;;  %s637_s29 = int_to_ptr.vmem [resolvable:$false] %s636_s29 }
  0x42   : > { %s638_s30 = scalar_lea.vmem %s637_s29, 256  ;;  %p639_p5 = scmp.lt.s32.totalorder %s874_s4, %s637_s29 }
  0x43   : > { %p634_p12 = pnand %p632_p9, %p618_p3  ;;  %p640_p10 = scmp.lt.s32.totalorder %s638_s30, %s631_s24 }
  0x45   : > { %p635_p0 = pneg %p634_p12  ;;  %p641_p4 = por %p640_p10, %p639_p5 }
  0x47   : > { %p642_p1 = pnand %p641_p4, %p635_p0 }
  0x49   : > { %645 = shalt.err (!%p642_p1)
}
  0x4a   : > { %525 = dma.hbm_to_vmem [thread:$0]  (!%p876_p11), %s872_s3, 128, %s874_s4, %s138_s26  }
  0x4b   : > { %p995_p7 = scmp.ne.s32.totalorder %s988_s21, 0 }
  0x4c   : > { %s908_s18 = sand.u32 (!%p995_p7), 1, %s716_s10   ;;  %p996_p3 = scmp.ne.s32.totalorder (!%p995_p7), %s986_s19, 0 }
  0x4d   : > { %158 = sbr.rel (%p995_p7) target bundleno = 440 (0x1b8), region = 28  ;;  %s485_s6 = sshll.u32 (!%p995_p7), %s908_s18, 3 }
  0x4e   : > { %s161_s7 = scalar_lea.sflag (!%p995_p7), [#allocation4], %s908_s18  ;;  %s164_s8 = scalar_lea.vmem (!%p995_p7), [#allocation3], %s485_s6 }
  0x54   : > { %699 = dma.done.wait (%p996_p3), %s161_s7, 128  }
  0x55   : > { %701 = vsyncadd (%p996_p3), %s161_s7, 4294967168  ;;  %p997_p11 = scmp.ne.s32.totalorder %s984_s17, 0 }
  0x57   : > { %703 = dma.done.wait (%p997_p11), [#allocation7], 128  }
  0x58   : > { %705 = vsyncadd (%p997_p11), [#allocation7], 4294967168  ;;  %v736_v0 = vmov 0.0   ;;  %s737_s21 = smov 2   ;;  %vm738_vm0 = vmmov 0   ;;  %v199_v1 = vld [vmem:[%s164_s8] sm:$0xff]  ;;  %v196_v3 = vlaneseq }
  0x59   : > { %203 = vrot.lane.b32.xlu0 %v736_v0, %s737_s21  ;;  %498 = vmatprep.subr.mxu1 %v736_v0  ;;  %s739_s3 = smov 1   ;;  %v198_v2 = vld [vmem:[#allocation6] sm:$0xff]  ;;  %s740_s19 = smov 120   ;;  %vm209_vm2 = vcmask 64512  }
  0x5a   : > { %500 = vmatprep.mubr.msk.f32.mxu1 %vm738_vm0, %v736_v0  ;;  %503 = vmatprep.subr.mxu0 %v736_v0  ;;  %v197_v5 = vand.u32 127, %v196_v3  ;;  %s491_s17 = sshll.u32 %s724_s12, 7  ;;  %s188_s4 = scalar_lea.vmem [#allocation8], %s485_s6 }
  0x5b   : > { %505 = vmatprep.mubr.msk.f32.mxu0 %vm738_vm0, %v736_v0  ;;  %284 = vrot.lane.b32.xlu1 %v199_v1, %s739_s3  ;;  %s387_s5 = sshll.u32 %s188_s4, 4  ;;  %s928_s16 = scalar_lea.hbm %s979_s2, %s491_s17  ;;  %s930_s5 = int_to_ptr.vmem [resolvable:$true] %s387_s5 }
  0x5c   : > { %vm205_vm1 = vcmp.lt.s32.totalorder %v197_v5, 2  ;;  %vm288_vm3 = vcmp.lt.s32.totalorder %v197_v5, 1  ;;  %s373_s23 = scalar_lea.sflag [#allocation5], %s908_s18  ;;  %s646_s24 = scalar_lea.vmem %s930_s5, 128 }
  0x5d   : > { %201 = vrot.lane.b32.xlu0 %v199_v1, %s737_s21  ;;  %p647_p2 = scmp.ne.s32.totalorder %s930_s5, %s646_s24  ;;  %s741_s12 = smov [#allocation8]  }
  0x5e   : > { %s650_s27 = sshll.u32 %s741_s12, 4  ;;  %s651_s27 = int_to_ptr.vmem [resolvable:$false] %s650_s27 }
  0x5f   : > { %286 = vrot.lane.b32.xlu1 %v736_v0, %s739_s3  ;;  %p648_p6 = pnand %p647_p2, %p858_p13  ;;  %s652_s29 = scalar_lea.vmem %s651_s27, 256 }
  0x60   : > { %p653_p9 = scmp.lt.s32.totalorder %s930_s5, %s651_s27  ;;  %p654_p12 = scmp.lt.s32.totalorder %s652_s29, %s646_s24 }
  0x61   : > { %292 = vrot.lane.b32.xlu0 %v198_v2, %s740_s19  ;;  %p649_p8 = pneg %p648_p6 }
  0x62   : > { %p655_p0 = por %p654_p12, %p653_p9 }
  0x64   : > { %p656_p5 = pnand %p655_p0, %p649_p8 }
  0xcb   : > { %v204_v4 = vpop.permute.xlu0 %203 }
  0xcd   : > { %v285_v6 = vpop.permute.xlu1 %284 }
  0xcf   : > { %v202_v7 = vpop.permute.xlu0 %201 }
  0xd0   : > { %v208_v8 = vsel %vm205_vm1, %v204_v4, %v202_v7 }
  0xd1   : > { %499 = vmatpush3.msra.mxu1 %v208_v8  ;;  %v287_v9 = vpop.permute.xlu1 %286 }
  0xd2   : > { %501 = vmatmul.mubr.msk.f32.vlgmr.msra.gmra.mrb[0].mxu1 %vm209_vm2, %v198_v2  ;;  %v291_v11 = vsel %vm288_vm3, %v287_v9, %v285_v6 }
  0xd3   : > { %v293_v10 = vpop.permute.xlu0 %292  ;;  %504 = vmatpush3.msra.mxu0 %v291_v11 }
  0xd4   : > { %506 = vmatmul.mubr.msk.f32.vlgmr.msra.gmra.mrb[0].mxu0 %vm209_vm2, %v293_v10 }
 0x1a5   : > { %v279_v12 = vpop.f32.mrb[0].mxu1 }
 0x1a6   : > { %v283_v13 = vadd.f32 %v279_v12, %v199_v1  ;;  %v502_v14 = vpop.f32.mrb[1].mxu1 }
 0x1a7   : > { %v362_v15 = vpop.f32.mrb[0].mxu0 }
 0x1a8   : > { %v366_v16 = vadd.f32 %v362_v15, %v283_v13  ;;  %v507_v17 = vpop.f32.mrb[1].mxu0 }
 0x1aa   : > { %367 = vst [vmem:[%s188_s4] sm:$0xff] %v366_v16 }
 0x1ab   : > { %659 = shalt.err (!%p656_p5)
}
 0x1ac   : > { %s660_s30 = scalar_lea.hbm %s928_s16, 128  ;;  %s664_s7 = scalar_lea.hbm %s979_s2, 256 }
 0x1ad   : > { %p661_p10 = scmp.ne.s32.totalorder %s928_s16, %s660_s30  ;;  %p665_p7 = scmp.lt.u32.totalorder %s928_s16, %s979_s2 }
 0x1ae   : > { %p666_p3 = scmp.lt.u32.totalorder %s664_s7, %s660_s30  ;;  %p668_p2 = scmp.lt.u32.totalorder %s660_s30, %s928_s16 }
 0x1af   : > { %p662_p4 = pnand %p661_p10, %p858_p13 }
 0x1b0   : > { %p667_p11 = por %p666_p3, %p665_p7 }
 0x1b1   : > { %p663_p1 = pneg %p662_p4 }
 0x1b2   : > { %p669_p6 = por %p668_p2, %p667_p11 }
 0x1b4   : > { %p670_p8 = pnand %p669_p6, %p663_p1 }
 0x1b6   : > { %673 = shalt.err (!%p670_p8)
}
 0x1b7   : > { %516 = dma.vmem_to_hbm [thread:$0]  (%p858_p13), %s930_s5, 128, %s928_s16, %s373_s23  }
 0x1b8 PF: > { %s399_s3 = sand.u32 1, %s712_s9   ;;  %p998_p9 = scmp.ne.s32.totalorder %s987_s20, 0 }
 0x1b9   : > { %p999_p12 = scmp.ge.s32.totalorder %s732_s14, 2  ;;  %s400_s19 = scalar_lea.sflag [#allocation5], %s399_s3 }
 0x1bb   : > { %p527_p0 = pnand %p999_p12, %p998_p9 }
 0x1bd   : > { %707 = dma.done.wait (!%p527_p0), %s400_s19, 128  }
 0x1be   : > { %709 = vsyncadd (!%p527_p0), %s400_s19, 4294967168  ;;  %s19_s14 = sadd.s32 1, %s732_s14   ;;  %s1000_s9 = smov %s716_s10 }
 0x1bf   : > { %p16_p5 = scmp.ge.s32.totalorder %s19_s14, 4   ;;  %s1001_s10 = smov %s720_s11 }
 0x1c0   : > { %s1002_s11 = smov %s866_s28  ;;  %s1003_s12 = smov %s728_s13 }
 0x1c1   : > { %s1004_s13 = smov %s1006_s25  ;;  %18 = sbr.rel (!%p16_p5) target bundleno = 7 (0x7), region = 85 }
 0x1c8   :  { %405 = vsyncpa [#allocation4], 1 }
 0x1c9   :  { %407 = vsyncpa [#allocation4 + $0x1], 1 }
 0x1ca   :  { %408 = vsyncpa [#allocation7], 1 }
 0x1cb   :  { %409 = vsyncpa [#allocation5], 1 }
 0x1cc   :  { %411 = vsyncpa [#allocation5 + $0x1], 1 }

</bundles_post_ra>
